<compile_context>
chip_gen: v6e
topology: v6e:2x2x1
jax: 0.10.0
libtpu: 0.0.40
codegen_flags: <defaults>
</compile_context>

<pallas_src>
import jax
import jax.numpy as jnp
from jax.experimental import pallas as pl
from jax.experimental.pallas import tpu as pltpu


def mlp_kernel(x_ref, w1_ref, b1_ref, w2_ref, b2_ref, w3r_ref, b3_ref, o_ref):
    # Layer 1: bf16 x bf16 on the MXU, f32 accumulation; bias + ReLU in f32 (VPU).
    h1 = jnp.dot(x_ref[...], w1_ref[...], preferred_element_type=jnp.float32)
    h1 = jnp.maximum(h1 + b1_ref[...], 0.0)
    # Layer 2: tiny f32 matmul (H1 -> H2), f32 accumulation; bias + ReLU in f32.
    h2 = jnp.dot(h1, w2_ref[...], preferred_element_type=jnp.float32)
    h2 = jnp.maximum(h2 + b2_ref[...], 0.0)
    # Layer 3: H2 -> 1 on the VPU (broadcast row of w3 and lane-reduce) to avoid
    # an almost-empty MXU tile and its push/drain bubble.
    out = jnp.sum(h2 * w3r_ref[...], axis=-1, keepdims=True) + b3_ref[...]
    o_ref[...] = out.astype(o_ref.dtype)
    # TODO(synk): nn.Dropout(p=0.01) in *training* mode (stochastic mask +
    # 1/(1-p) rescale) is not reproduced; eval-mode forward (identity) is used.


def _round_up(n, m):
    return ((n + m - 1) // m) * m


def layer_calibration_forward(x, params, *, block_b=256):
    """x: [B, F] float32 -> [B, 1] float32, matching LayerCalibration.forward."""
    w1, b1, w2, b2, w3, b3 = params
    B, F = x.shape
    H1 = w1.shape[1]
    H2 = w2.shape[1]

    # Batch tile: at least fills the MXU M dimension when B allows, always a
    # multiple of 8 (sublane) after padding.
    TB = min(block_b, _round_up(B, 8))
    B_pad = _round_up(B, TB)
    num_tiles = B_pad // TB

    x_p = x if B_pad == B else jnp.pad(x, ((0, B_pad - B), (0, 0)))

    # bf16 inputs for the layer-1 matmul (half the DMA bytes, bf16 MXU path);
    # everything downstream stays f32.
    x_bf = x_p.astype(jnp.bfloat16)
    w1_bf = w1.astype(jnp.bfloat16)
    w3_row = jnp.transpose(w3)  # (1, H2) broadcast row for the VPU reduction.

    flops = 2 * B_pad * (F * H1 + H1 * H2 + H2)
    bytes_accessed = (
        B_pad * F * 2                       # x (bf16)
        + F * H1 * 2                        # w1 (bf16)
        + (H1 + H1 * H2 + H2 + H2 + 1) * 4  # b1, w2, b2, w3, b3 (f32)
        + B_pad * 4                         # output (f32)
    )

    out_padded = pl.pallas_call(
        mlp_kernel,
        out_shape=jax.ShapeDtypeStruct((B_pad, 1), jnp.float32),
        grid_spec=pltpu.PrefetchScalarGridSpec(
            num_scalar_prefetch=0,
            grid=(num_tiles,),
            in_specs=[
                pl.BlockSpec((TB, F), lambda i: (i, 0)),   # x tile (pipelined)
                pl.BlockSpec((F, H1), lambda i: (0, 0)),   # w1 (resident)
                pl.BlockSpec((1, H1), lambda i: (0, 0)),   # b1
                pl.BlockSpec((H1, H2), lambda i: (0, 0)),  # w2
                pl.BlockSpec((1, H2), lambda i: (0, 0)),   # b2
                pl.BlockSpec((1, H2), lambda i: (0, 0)),   # w3 (as a row)
                pl.BlockSpec((1, 1), lambda i: (0, 0)),    # b3
            ],
            out_specs=pl.BlockSpec((TB, 1), lambda i: (i, 0)),
        ),
        compiler_params=pltpu.CompilerParams(
            dimension_semantics=("parallel",),   # megacore sharding on v7x
            vmem_limit_bytes=32 << 20,           # sized with headroom for v7x's 64 MiB
        ),
        cost_estimate=pl.CostEstimate(
            flops=flops, transcendentals=0, bytes_accessed=bytes_accessed
        ),
    )(x_bf, w1_bf, b1, w2, b2, w3_row, b3)

    return out_padded[:B]


def init_params(key, features):
    """Deterministic init matching nn.Linear shapes (uniform +/- 1/sqrt(fan_in))."""
    h1 = features // 10
    h2 = features // 100
    dims = [(features, h1), (h1, h2), (h2, 1)]
    params = []
    for fan_in, fan_out in dims:
        key, kw, kb = jax.random.split(key, 3)
        bound = 1.0 / jnp.sqrt(fan_in)
        w = jax.random.uniform(kw, (fan_in, fan_out), jnp.float32, -bound, bound)
        b = jax.random.uniform(kb, (1, fan_out), jnp.float32, -bound, bound)
        params += [w, b]
    return tuple(params)


def reference_forward(x, params, *, layer1_bf16=True):
    w1, b1, w2, b2, w3, b3 = params
    if layer1_bf16:
        h1 = jnp.dot(x.astype(jnp.bfloat16), w1.astype(jnp.bfloat16),
                     preferred_element_type=jnp.float32)
    else:
        h1 = x @ w1
    h1 = jnp.maximum(h1 + b1, 0.0)
    h2 = jnp.maximum(h1 @ w2 + b2, 0.0)
    return h2 @ w3 + b3


if __name__ == "__main__":
    key = jax.random.PRNGKey(0)
    # Flattened calorimeter features per event; F chosen so F//10 and F//100 are
    # valid hidden sizes.  B=384 exercises the batch grid (2 tiles of 256 after
    # padding) while staying small.
    B, F = 384, 400
    kx, kp = jax.random.split(key)
    x = jax.random.normal(kx, (B, F), jnp.float32)
    params = init_params(kp, F)

    fwd = jax.jit(layer_calibration_forward)
    out = jax.block_until_ready(fwd(x, params))
    assert out.shape == (B, 1)

    # Exact-path check: reference with the same bf16 layer-1 inputs.
    ref_bf16 = reference_forward(x, params, layer1_bf16=True)
    assert jnp.allclose(out, ref_bf16, atol=1e-3, rtol=1e-3)
    # Sanity check against the pure-f32 PyTorch-equivalent forward (bf16 layer-1
    # inputs only introduce small rounding error for this calibration net).
    ref_f32 = reference_forward(x, params, layer1_bf16=False)
    assert jnp.allclose(out, ref_f32, atol=5e-2, rtol=5e-2)

    print("KERNEL_OK")
</pallas_src>

<mosaic_0001>
module attributes {stable_mosaic.version = 11 : i64} {
  func.func @mlp_kernel(%arg0: i32, %arg1: memref<256x400xbf16, #tpu.memory_space<vmem>>, %arg2: memref<400x40xbf16, #tpu.memory_space<vmem>>, %arg3: memref<1x40xf32, #tpu.memory_space<vmem>>, %arg4: memref<40x4xf32, #tpu.memory_space<vmem>>, %arg5: memref<1x4xf32, #tpu.memory_space<vmem>>, %arg6: memref<1x4xf32, #tpu.memory_space<vmem>>, %arg7: memref<1x1xf32, #tpu.memory_space<vmem>>, %arg8: memref<256x1xf32, #tpu.memory_space<vmem>>) attributes {dimension_semantics = [#tpu.dimension_semantics<parallel>], iteration_bounds = array<i64: 2>, scalar_prefetch = 0 : i64, scratch_operands = 0 : i64, tpu.core_type = #tpu.core_type<tc>, window_params = [{transform_indices = @transform_0, window_bounds = array<i64: 256, 400>}, {pipeline_mode = #tpu.pipeline_mode<synchronous>, transform_indices = @transform_1, window_bounds = array<i64: 400, 40>}, {pipeline_mode = #tpu.pipeline_mode<synchronous>, transform_indices = @transform_2, window_bounds = array<i64: 1, 40>}, {pipeline_mode = #tpu.pipeline_mode<synchronous>, transform_indices = @transform_3, window_bounds = array<i64: 40, 4>}, {pipeline_mode = #tpu.pipeline_mode<synchronous>, transform_indices = @transform_4, window_bounds = array<i64: 1, 4>}, {pipeline_mode = #tpu.pipeline_mode<synchronous>, transform_indices = @transform_5, window_bounds = array<i64: 1, 4>}, {pipeline_mode = #tpu.pipeline_mode<synchronous>, transform_indices = @transform_6, window_bounds = array<i64: 1, 1>}, {transform_indices = @transform_7, window_bounds = array<i64: 256, 1>}]} {
    %c0 = arith.constant 0 : index
    %c0_0 = arith.constant 0 : index
    %0 = vector.load %arg1[%c0, %c0_0] : memref<256x400xbf16, #tpu.memory_space<vmem>>, vector<256x400xbf16>
    %c0_1 = arith.constant 0 : index
    %c0_2 = arith.constant 0 : index
    %1 = vector.load %arg2[%c0_1, %c0_2] : memref<400x40xbf16, #tpu.memory_space<vmem>>, vector<400x40xbf16>
    %cst = arith.constant dense<0.000000e+00> : vector<256x40xf32>
    %2 = tpu.matmul %0, %1, %cst {dimension_numbers = #tpu.dot_dimension_numbers<[1], [0], [0], [1], [0, 0, 1, 1], [], []>} : vector<256x400xbf16>, vector<400x40xbf16>, vector<256x40xf32> -> vector<256x40xf32>
    %c0_3 = arith.constant 0 : index
    %c0_4 = arith.constant 0 : index
    %3 = vector.load %arg3[%c0_3, %c0_4] : memref<1x40xf32, #tpu.memory_space<vmem>>, vector<1x40xf32>
    %4 = vector.broadcast %3 : vector<1x40xf32> to vector<256x40xf32>
    %5 = arith.addf %2, %4 : vector<256x40xf32>
    %cst_5 = arith.constant 0.000000e+00 : f32
    %6 = vector.broadcast %cst_5 : f32 to vector<256x40xf32>
    %7 = arith.maximumf %5, %6 : vector<256x40xf32>
    %c0_6 = arith.constant 0 : index
    %c0_7 = arith.constant 0 : index
    %8 = vector.load %arg4[%c0_6, %c0_7] : memref<40x4xf32, #tpu.memory_space<vmem>>, vector<40x4xf32>
    %cst_8 = arith.constant dense<0.000000e+00> : vector<256x4xf32>
    %9 = tpu.matmul %7, %8, %cst_8 {dimension_numbers = #tpu.dot_dimension_numbers<[1], [0], [0], [1], [0, 0, 1, 1], [], []>} : vector<256x40xf32>, vector<40x4xf32>, vector<256x4xf32> -> vector<256x4xf32>
    %c0_9 = arith.constant 0 : index
    %c0_10 = arith.constant 0 : index
    %10 = vector.load %arg5[%c0_9, %c0_10] : memref<1x4xf32, #tpu.memory_space<vmem>>, vector<1x4xf32>
    %11 = vector.broadcast %10 : vector<1x4xf32> to vector<256x4xf32>
    %12 = arith.addf %9, %11 : vector<256x4xf32>
    %cst_11 = arith.constant 0.000000e+00 : f32
    %13 = vector.broadcast %cst_11 : f32 to vector<256x4xf32>
    %14 = arith.maximumf %12, %13 : vector<256x4xf32>
    %c0_12 = arith.constant 0 : index
    %c0_13 = arith.constant 0 : index
    %15 = vector.load %arg6[%c0_12, %c0_13] : memref<1x4xf32, #tpu.memory_space<vmem>>, vector<1x4xf32>
    %16 = vector.broadcast %15 : vector<1x4xf32> to vector<256x4xf32>
    %17 = arith.mulf %14, %16 : vector<256x4xf32>
    %cst_14 = arith.constant dense<0.000000e+00> : vector<256xf32>
    %18 = vector.multi_reduction <add>, %17, %cst_14 [1] : vector<256x4xf32> to vector<256xf32>
    %19 = vector.shape_cast %18 : vector<256xf32> to vector<256x1xf32>
    %c0_15 = arith.constant 0 : index
    %c0_16 = arith.constant 0 : index
    %20 = vector.load %arg7[%c0_15, %c0_16] : memref<1x1xf32, #tpu.memory_space<vmem>>, vector<1x1xf32>
    %21 = vector.broadcast %20 : vector<1x1xf32> to vector<256x1xf32>
    %22 = arith.addf %19, %21 : vector<256x1xf32>
    %c0_17 = arith.constant 0 : index
    %c0_18 = arith.constant 0 : index
    %23 = vector.load %arg8[%c0_17, %c0_18] : memref<256x1xf32, #tpu.memory_space<vmem>>, vector<256x1xf32>
    tpu.vector_store %arg8[%c0_17, %c0_18], %22 {strides = array<i32>} : memref<256x1xf32, #tpu.memory_space<vmem>>, vector<256x1xf32>,
    return
  }
  func.func @transform_0(%arg0: i32) -> (i32, i32) {
    %c0_i32 = arith.constant 0 : i32
    %c0_i32_0 = arith.constant 0 : i32
    return %arg0, %c0_i32 : i32, i32
  }
  func.func @transform_1(%arg0: i32) -> (i32, i32) {
    %c0_i32 = arith.constant 0 : i32
    %c0_i32_0 = arith.constant 0 : i32
    %c0_i32_1 = arith.constant 0 : i32
    return %c0_i32, %c0_i32_0 : i32, i32
  }
  func.func @transform_2(%arg0: i32) -> (i32, i32) {
    %c0_i32 = arith.constant 0 : i32
    %c0_i32_0 = arith.constant 0 : i32
    %c0_i32_1 = arith.constant 0 : i32
    return %c0_i32, %c0_i32_0 : i32, i32
  }
  func.func @transform_3(%arg0: i32) -> (i32, i32) {
    %c0_i32 = arith.constant 0 : i32
    %c0_i32_0 = arith.constant 0 : i32
    %c0_i32_1 = arith.constant 0 : i32
    return %c0_i32, %c0_i32_0 : i32, i32
  }
  func.func @transform_4(%arg0: i32) -> (i32, i32) {
    %c0_i32 = arith.constant 0 : i32
    %c0_i32_0 = arith.constant 0 : i32
    %c0_i32_1 = arith.constant 0 : i32
    return %c0_i32, %c0_i32_0 : i32, i32
  }
  func.func @transform_5(%arg0: i32) -> (i32, i32) {
    %c0_i32 = arith.constant 0 : i32
    %c0_i32_0 = arith.constant 0 : i32
    %c0_i32_1 = arith.constant 0 : i32
    return %c0_i32, %c0_i32_0 : i32, i32
  }
  func.func @transform_6(%arg0: i32) -> (i32, i32) {
    %c0_i32 = arith.constant 0 : i32
    %c0_i32_0 = arith.constant 0 : i32
    %c0_i32_1 = arith.constant 0 : i32
    return %c0_i32, %c0_i32_0 : i32, i32
  }
  func.func @transform_7(%arg0: i32) -> (i32, i32) {
    %c0_i32 = arith.constant 0 : i32
    %c0_i32_0 = arith.constant 0 : i32
    return %arg0, %c0_i32 : i32, i32
  }
}

</mosaic_0001>

<bundles_post_ra>
// kernel: layer_calibration_forward.1
= control target key start
LH: loop header
LB: loop body
LE: loop exit
PB: predicated region body
PF: predicated region fallthrough
CT: control target
= control target key end

     0   :  { %s2449_s26 = smov 0   ;;  %s2926_s0 = inlined_call_operand.vmem [shape: bf16[512,400], index: 0, kind: input, shape index: {}]   ;;  %s2927_s1 = inlined_call_operand.vmem [shape: bf16[400,40], index: 1, kind: input, shape index: {}]   ;;  %s2928_s2 = inlined_call_operand.vmem [shape: f32[1,40], index: 2, kind: input, shape index: {}]   ;;  %s2929_s3 = inlined_call_operand.vmem [shape: f32[40,4], index: 3, kind: input, shape index: {}]   ;;  %s2930_s4 = inlined_call_operand.vmem [shape: f32[1,4], index: 4, kind: input, shape index: {}]   ;;  %s2931_s5 = inlined_call_operand.vmem [shape: f32[1,4], index: 5, kind: input, shape index: {}]   ;;  %s2932_s6 = inlined_call_operand.<no memory space> [shape: f32[1,1], index: 6, kind: input, shape index: {}]   ;;  %s2933_s7 = inlined_call_operand.vmem [shape: f32[512,1], index: 7, kind: output, shape index: {}]  }
   0x1   :  { %v12_v0 = vstv %s2932_s6 }
   0x2   :  { %13 = vst [vmem:[#allocation2] sm:$0x1] %v12_v0 }
   0x3 LB: > { %s1896_s27 = sadd.s32 4294967295, %s2403_s26   ;;  %p1900_p0 = scmp.ge.s32.totalorder %s2403_s26, 1  ;;  %s2403_s26 = sphi %s2449_s26, %s19_s26  }
   0x4   : > { %p241_p1 = scmp.lt.s32.totalorder %s2403_s26, 3 }
   0x6   : > { %p242_p2 = pnand %p1900_p0, %p241_p1 }
   0x7   : > { %s1901_s22 = sshll.u32 (!%p242_p2), %s1896_s27, 5 }
   0x8   : > { %245 = sbr.rel (%p242_p2) target bundleno = 717 (0x2cd), region = 48  ;;  %p275_p3 = scmp.lt.s32.totalorder (!%p242_p2), %s1901_s22, 63 }
   0xd   : > { %v2276_v1 = vld [vmem:[%s2927_s1 + $0x78] sm:$0xff]   ;;  %v2405_v2 = vmov 0   ;;  %v2279_v5 = vld [vmem:[%s2927_s1 + $0x70] sm:$0xff]   ;;  %v2282_v8 = vld [vmem:[%s2927_s1 + $0x68] sm:$0xff]   ;;  %s2935_s22 = smov (!%p275_p3, %s1901_s22), 63  ;;  %vm863_vm0 = vcmask 130048  }
   0xe   : > { %1073 = vmatprep.subr.bf16.mxu1 %v2405_v2  ;;  %v2277_v3 = vld [vmem:[%s2927_s1 + $0xb8] sm:$0xff]   ;;  %2050 = vmatprep.subr.bf16.mxu0 %v2276_v1  ;;  %v2280_v6 = vld [vmem:[%s2927_s1 + $0xb0] sm:$0xff]   ;;  %v2283_v9 = vld [vmem:[%s2927_s1 + $0xa8] sm:$0xff]   ;;  %s2049_s16 = sshll.u32 %s2935_s22, 4  ;;  %vm1278_vm1 = vcmask 326656   ;;  %vm1671_vm2 = vcmask 31744  }
   0xf   : > { %v2278_v4 = vld [vmem:[%s2927_s1 + $0x38] sm:$0xff]   ;;  %1074 = vmatpush1.bf16.msra.mxu1 %v2277_v3  ;;  %v2281_v7 = vld [vmem:[%s2927_s1 + $0x30] sm:$0xff]   ;;  %v2284_v10 = vld [vmem:[%s2927_s1 + $0x28] sm:$0xff]   ;;  %s2529_s28 = scalar_lea.vmem %s2926_s0, %s2049_s16  ;;  %s1905_s8 = sshll.u32 %s2935_s22, 3  ;;  %vm1807_vm3 = vcmask 7168  }
  0x10   : > { %2051 = vmatpush3.bf16.msra.mxu0 %v2278_v4  ;;  %1075 = vmatprep.subr.bf16.mxu1 %v2405_v2  ;;  %v2285_v11 = vld [vmem:[%s2927_s1 + $0x60] sm:$0xff]   ;;  %v2288_v14 = vld [vmem:[%s2927_s1 + $0x58] sm:$0xff]   ;;  %v2291_v17 = vld [vmem:[%s2927_s1 + $0x50] sm:$0xff]   ;;  %s2825_s11 = scalar_lea.vmem %s2933_s7, %s1905_s8 }
  0x11   : > { %2052 = vmatprep.subr.bf16.mxu0 %v2279_v5  ;;  %v2286_v12 = vld [vmem:[%s2927_s1 + $0xa0] sm:$0xff]   ;;  %v2289_v15 = vld [vmem:[%s2927_s1 + $0x98] sm:$0xff]   ;;  %v2292_v18 = vld [vmem:[%s2927_s1 + $0x90] sm:$0xff]  }
  0x12   : > { %v2287_v13 = vld [vmem:[%s2927_s1 + $0x20] sm:$0xff]   ;;  %v2290_v16 = vld [vmem:[%s2927_s1 + $0x18] sm:$0xff]   ;;  %v2293_v19 = vld [vmem:[%s2927_s1 + $0x10] sm:$0xff]  }
  0x13   : > { %1076 = vmatpush1.bf16.msra.mxu1 %v2280_v6  ;;  %v2294_v20 = vld [vmem:[%s2927_s1 + $0x48] sm:$0xff]   ;;  %v2297_v23 = vld [vmem:[%s2927_s1 + $0x40] sm:$0xff]   ;;  %v1269_v50 = vld [vmem:[%s2929_s3 + $0x18] sm:$0xff] }
  0x14   : > { %2053 = vmatpush3.bf16.msra.mxu0 %v2281_v7  ;;  %1077 = vmatprep.subr.bf16.mxu1 %v2405_v2  ;;  %v2295_v21 = vld [vmem:[%s2927_s1 + $0x88] sm:$0xff]   ;;  %v2302_v24 = vld [vmem:[%s2529_s28 + $0x4] ss:$16 sps:$4 sm:$0xff]   ;;  %v2300_v28 = vld [vmem:[%s2529_s28] ss:$16 sps:$4 sm:$0xff]  }
  0x15   : > { %2054 = vmatprep.subr.bf16.mxu0 %v2282_v8  ;;  %v2296_v22 = vld [vmem:[%s2927_s1 + $0x8] sm:$0xff]   ;;  %v2298_v25 = vld [vmem:[%s2927_s1 + $0x80] sm:$0xff]   ;;  %944 = vmatprep.mubr.bf16.mxu0 %v2302_v24  ;;  %v1268_v51 = vld [vmem:[%s2929_s3 + $0x10] sm:$0xff] }
  0x16   : > { %v2306_v26 = vld [vmem:[%s2529_s28 + $0xc] ss:$16 sps:$4 sm:$0xff]   ;;  %v2299_v27 = vld [vmem:[%s2927_s1] sm:$0xff]   ;;  %v2304_v31 = vld [vmem:[%s2529_s28 + $0x8] ss:$16 sps:$4 sm:$0xff]  }
  0x17   : > { %1078 = vmatpush1.bf16.msra.mxu1 %v2283_v9  ;;  %1996 = vmatprep.mubr.msk.bf16.mxu1 %vm863_vm0, %v2306_v26  ;;  %v2303_v29 = vld [vmem:[%s2927_s1 + $0xc0] sm:$0xff]   ;;  %v2310_v32 = vld [vmem:[%s2529_s28 + $0x2c] ss:$16 sps:$4 sm:$0xff]   ;;  %v2312_v35 = vld [vmem:[%s2529_s28 + $0x28] ss:$16 sps:$4 sm:$0xff]  }
  0x18   : > { %2055 = vmatpush3.bf16.msra.mxu0 %v2284_v10  ;;  %1079 = vmatprep.subr.bf16.mxu1 %v2405_v2  ;;  %v2307_v30 = vld [vmem:[%s2529_s28 + $0x24] ss:$16 sps:$4 sm:$0xff]   ;;  %v2309_v33 = vld [vmem:[%s2529_s28 + $0x20] ss:$16 sps:$4 sm:$0xff]   ;;  %v2316_v36 = vld [vmem:[%s2529_s28 + $0x4c] ss:$16 sps:$4 sm:$0xff]  }
  0x19   : > { %2056 = vmatprep.subr.bf16.mxu0 %v2285_v11  ;;  %v2313_v34 = vld [vmem:[%s2529_s28 + $0x44] ss:$16 sps:$4 sm:$0xff]   ;;  %v2315_v37 = vld [vmem:[%s2529_s28 + $0x40] ss:$16 sps:$4 sm:$0xff]   ;;  %v2318_v39 = vld [vmem:[%s2529_s28 + $0x48] ss:$16 sps:$4 sm:$0xff]  }
  0x1a   : > { %v2319_v38 = vld [vmem:[%s2529_s28 + $0x64] ss:$16 sps:$4 sm:$0xff]   ;;  %v2322_v40 = vld [vmem:[%s2529_s28 + $0x6c] ss:$16 sps:$4 sm:$0xff]   ;;  %v2321_v41 = vld [vmem:[%s2529_s28 + $0x60] ss:$16 sps:$4 sm:$0xff]  }
  0x1b   : > { %1080 = vmatpush1.bf16.msra.mxu1 %v2286_v12  ;;  %v2325_v42 = vld [vmem:[%s2529_s28 + $0x84] ss:$16 sps:$4 sm:$0xff]   ;;  %v2324_v43 = vld [vmem:[%s2529_s28 + $0x68] ss:$16 sps:$4 sm:$0xff]   ;;  %v2328_v44 = vld [vmem:[%s2529_s28 + $0x8c] ss:$16 sps:$4 sm:$0xff]  }
  0x1c   : > { %2057 = vmatpush3.bf16.msra.mxu0 %v2287_v13  ;;  %1081 = vmatprep.subr.bf16.mxu1 %v2405_v2  ;;  %v2327_v45 = vld [vmem:[%s2529_s28 + $0x80] ss:$16 sps:$4 sm:$0xff]   ;;  %v2331_v46 = vld [vmem:[%s2529_s28 + $0xa4] ss:$16 sps:$4 sm:$0xff]   ;;  %v2330_v47 = vld [vmem:[%s2529_s28 + $0x88] ss:$16 sps:$4 sm:$0xff]  }
  0x1d   : > { %2058 = vmatprep.subr.bf16.mxu0 %v2288_v14  ;;  %v2334_v48 = vld [vmem:[%s2529_s28 + $0xac] ss:$16 sps:$4 sm:$0xff]   ;;  %v1270_v49 = vld [vmem:[%s2929_s3 + $0x20] sm:$0xff]  ;;  %v2336_v54 = vld [vmem:[%s2529_s28 + $0xa8] ss:$16 sps:$4 sm:$0xff]  }
  0x1e   : > { %v2333_v52 = vld [vmem:[%s2529_s28 + $0xa0] ss:$16 sps:$4 sm:$0xff]   ;;  %v2337_v53 = vld [vmem:[%s2529_s28 + $0xc4] ss:$16 sps:$4 sm:$0xff]   ;;  %v2340_v55 = vld [vmem:[%s2529_s28 + $0xcc] ss:$16 sps:$4 sm:$0xff]  }
  0x1f   : > { %1082 = vmatpush1.bf16.msra.mxu1 %v2289_v15  ;;  %v2339_v56 = vld [vmem:[%s2529_s28 + $0xc0] ss:$16 sps:$4 sm:$0xff]   ;;  %v2343_v57 = vld [vmem:[%s2529_s28 + $0xe4] ss:$16 sps:$4 sm:$0xff]   ;;  %v2342_v58 = vld [vmem:[%s2529_s28 + $0xc8] ss:$16 sps:$4 sm:$0xff]  }
  0x20   : > { %2059 = vmatpush3.bf16.msra.mxu0 %v2290_v16  ;;  %1083 = vmatprep.subr.bf16.mxu1 %v2405_v2  ;;  %v2346_v59 = vld [vmem:[%s2529_s28 + $0xec] ss:$16 sps:$4 sm:$0xff]   ;;  %v2345_v60 = vld [vmem:[%s2529_s28 + $0xe0] ss:$16 sps:$4 sm:$0xff]   ;;  %v2349_v61 = vld [vmem:[%s2529_s28 + $0x104] ss:$16 sps:$4 sm:$0xff]  }
  0x21   : > { %2060 = vmatprep.subr.bf16.mxu0 %v2291_v17  ;;  %v2348_v62 = vld [vmem:[%s2529_s28 + $0xe8] ss:$16 sps:$4 sm:$0xff]   ;;  %v2352_v63 = vld [vmem:[%s2529_s28 + $0x10c] ss:$16 sps:$4 sm:$0xff]   ;;  %v2351_v0 = vld [vmem:[%s2529_s28 + $0x100] ss:$16 sps:$4 sm:$0xff]  }
  0x22   : > { %v2355_v1 = vld [vmem:[%s2529_s28 + $0x124] ss:$16 sps:$4 sm:$0xff]   ;;  %v2358_v3 = vld [vmem:[%s2529_s28 + $0x12c] ss:$16 sps:$4 sm:$0xff]   ;;  %v2357_v4 = vld [vmem:[%s2529_s28 + $0x120] ss:$16 sps:$4 sm:$0xff]  }
  0x23   : > { %1084 = vmatpush1.bf16.msra.mxu1 %v2292_v18  ;;  %v2361_v5 = vld [vmem:[%s2529_s28 + $0x144] ss:$16 sps:$4 sm:$0xff]   ;;  %v2360_v6 = vld [vmem:[%s2529_s28 + $0x128] ss:$16 sps:$4 sm:$0xff]   ;;  %v2364_v7 = vld [vmem:[%s2529_s28 + $0x14c] ss:$16 sps:$4 sm:$0xff]  }
  0x24   : > { %2061 = vmatpush3.bf16.msra.mxu0 %v2293_v19  ;;  %1085 = vmatprep.subr.bf16.mxu1 %v2405_v2  ;;  %v1267_v8 = vld [vmem:[%s2929_s3 + $0x8] sm:$0xff]  ;;  %v2363_v9 = vld [vmem:[%s2529_s28 + $0x140] ss:$16 sps:$4 sm:$0xff]   ;;  %v2367_v11 = vld [vmem:[%s2529_s28 + $0x164] ss:$16 sps:$4 sm:$0xff]  }
  0x25   : > { %2062 = vmatprep.subr.bf16.mxu0 %v2294_v20  ;;  %v1266_v10 = vld [vmem:[%s2929_s3] sm:$0xff]  ;;  %v2366_v12 = vld [vmem:[%s2529_s28 + $0x148] ss:$16 sps:$4 sm:$0xff]   ;;  %v2370_v13 = vld [vmem:[%s2529_s28 + $0x16c] ss:$16 sps:$4 sm:$0xff]  }
  0x26   : > { %v2369_v14 = vld [vmem:[%s2529_s28 + $0x160] ss:$16 sps:$4 sm:$0xff]   ;;  %v2373_v15 = vld [vmem:[%s2529_s28 + $0x184] ss:$16 sps:$4 sm:$0xff]   ;;  %v2372_v16 = vld [vmem:[%s2529_s28 + $0x168] ss:$16 sps:$4 sm:$0xff]  }
  0x27   : > { %1086 = vmatpush1.bf16.msra.mxu1 %v2295_v21  ;;  %v2376_v17 = vld [vmem:[%s2529_s28 + $0x18c] ss:$16 sps:$4 sm:$0xff]   ;;  %v2375_v18 = vld [vmem:[%s2529_s28 + $0x180] ss:$16 sps:$4 sm:$0xff]   ;;  %v2379_v19 = vld [vmem:[%s2529_s28 + $0x1a4] ss:$16 sps:$4 sm:$0xff]  }
  0x28   : > { %2063 = vmatpush3.bf16.msra.mxu0 %v2296_v22  ;;  %1087 = vmatprep.subr.bf16.mxu1 %v2405_v2  ;;  %v2378_v20 = vld [vmem:[%s2529_s28 + $0x188] ss:$16 sps:$4 sm:$0xff]   ;;  %v2382_v21 = vld [vmem:[%s2529_s28 + $0x1ac] ss:$16 sps:$4 sm:$0xff]   ;;  %v2381_v22 = vld [vmem:[%s2529_s28 + $0x1a0] ss:$16 sps:$4 sm:$0xff]  }
  0x29   : > { %2064 = vmatprep.subr.bf16.mxu0 %v2297_v23  ;;  %v2385_v23 = vld [vmem:[%s2529_s28 + $0x1c4] ss:$16 sps:$4 sm:$0xff]   ;;  %v2384_v24 = vld [vmem:[%s2529_s28 + $0x1a8] ss:$16 sps:$4 sm:$0xff]   ;;  %v2387_v26 = vld [vmem:[%s2529_s28 + $0x1c0] ss:$16 sps:$4 sm:$0xff]  }
  0x2b   : > { %1088 = vmatpush1.bf16.msra.mxu1 %v2298_v25  ;;  %v2388_v25 = vld [vmem:[%s2529_s28 + $0x1cc] ss:$16 sps:$4 sm:$0xff]  }
  0x2c   : > { %2065 = vmatpush3.bf16.msra.mxu0 %v2299_v27  ;;  %1103 = vmatprep.subr.bf16.mxu1 %v2405_v2  ;;  %v2354_v2 = vld [vmem:[%s2529_s28 + $0x108] ss:$16 sps:$4 sm:$0xff]   ;;  %v2391_v27 = vld [vmem:[%s2529_s28 + $0x1e4] ss:$16 sps:$4 sm:$0xff]  }
  0x2d   : > { %2199 = vmatprep.subr.mxu0 %v1270_v49 }
  0x2f   : > { %945 = vmatmul.mubr.bf16.vlgmr.msra.gmra.mxu0 %v2300_v28  ;;  %1104 = vmatpush2.bf16.msra.mxu1 %v2303_v29  ;;  %v2390_v28 = vld [vmem:[%s2529_s28 + $0x1c8] ss:$16 sps:$4 sm:$0xff]   ;;  %v2394_v29 = vld [vmem:[%s2529_s28 + $0x1ec] ss:$16 sps:$4 sm:$0xff]  }
  0x30   : > { %952 = vmatprep.mubr.bf16.mxu0 %v2307_v30  ;;  %2200 = vmatpush3.msra.mxu0 %v1270_v49  ;;  %v2393_v30 = vld [vmem:[%s2529_s28 + $0x1e0] ss:$16 sps:$4 sm:$0xff]  }
  0x31   : > { %2257 = vmatprep.subr.mxu1 %v1270_v49  ;;  %2201 = vmatprep.subr.mxu0 %v1269_v50 }
  0x32   : > { %1106 = vmatmul.mubr.bf16.vlgmr.msra.gmra.mxu1 %v2304_v31  ;;  %2202 = vmatpush3.msra.mxu0 %v1269_v50  ;;  %v2396_v31 = vld [vmem:[%s2529_s28 + $0x1e8] ss:$16 sps:$4 sm:$0xff]  }
  0x33   : > { %1997 = vmatprep.mubr.msk.bf16.mxu1 %vm863_vm0, %v2310_v32  ;;  %2262 = vmatpush3.msra.mxu1 %v1270_v49 }
  0x34   : > { %2203 = vmatprep.subr.mxu0 %v1268_v51  ;;  %2258 = vmatprep.subr.mxu1 %v1269_v50 }
  0x35   : > { %2204 = vmatpush3.msra.mxu0 %v1268_v51  ;;  %2263 = vmatpush3.msra.mxu1 %v1269_v50 }
  0x36   : > { %2259 = vmatprep.subr.mxu1 %v1268_v51  ;;  %2205 = vmatprep.subr.mxu0 %v1267_v8 }
  0x37   : > { %953 = vmatmul.mubr.bf16.gmra.mxu0 %v2309_v33  ;;  %2264 = vmatpush3.msra.mxu1 %v1268_v51 }
  0x38   : > { %960 = vmatprep.mubr.bf16.mxu0 %v2313_v34  ;;  %2206 = vmatpush3.msra.mxu0 %v1267_v8  ;;  %v2647_v34 = vld [vmem:[%s2928_s2] ss:$0 sm:$0xff] }
  0x39   : > { %2207 = vmatprep.subr.mxu0 %v1266_v10  ;;  %2260 = vmatprep.subr.mxu1 %v1267_v8 }
  0x3a   : > { %1114 = vmatmul.mubr.bf16.gmra.mxu1 %v2312_v35  ;;  %2208 = vmatpush3.msra.mxu0 %v1266_v10 }
  0x3b   : > { %1998 = vmatprep.mubr.msk.bf16.mxu1 %vm863_vm0, %v2316_v36  ;;  %2265 = vmatpush3.msra.mxu1 %v1267_v8 }
  0x3c   : > { %2261 = vmatprep.subr.mxu1 %v1266_v10 }
  0x3d   : > { %2266 = vmatpush3.msra.mxu1 %v1266_v10 }
  0x3f   : > { %961 = vmatmul.mubr.bf16.gmra.mxu0 %v2315_v37 }
  0x40   : > { %968 = vmatprep.mubr.bf16.mxu0 %v2319_v38 }
  0x42   : > { %1122 = vmatmul.mubr.bf16.gmra.mxu1 %v2318_v39 }
  0x43   : > { %1999 = vmatprep.mubr.msk.bf16.mxu1 %vm863_vm0, %v2322_v40 }
  0x47   : > { %969 = vmatmul.mubr.bf16.gmra.mxu0 %v2321_v41 }
  0x48   : > { %976 = vmatprep.mubr.bf16.mxu0 %v2325_v42 }
  0x4a   : > { %1130 = vmatmul.mubr.bf16.gmra.mxu1 %v2324_v43 }
  0x4b   : > { %2000 = vmatprep.mubr.msk.bf16.mxu1 %vm863_vm0, %v2328_v44 }
  0x4f   : > { %977 = vmatmul.mubr.bf16.gmra.mxu0 %v2327_v45 }
  0x50   : > { %984 = vmatprep.mubr.bf16.mxu0 %v2331_v46 }
  0x52   : > { %1138 = vmatmul.mubr.bf16.gmra.mxu1 %v2330_v47 }
  0x53   : > { %2001 = vmatprep.mubr.msk.bf16.mxu1 %vm863_vm0, %v2334_v48 }
  0x57   : > { %985 = vmatmul.mubr.bf16.gmra.mxu0 %v2333_v52 }
  0x58   : > { %992 = vmatprep.mubr.bf16.mxu0 %v2337_v53 }
  0x5a   : > { %1146 = vmatmul.mubr.bf16.gmra.mxu1 %v2336_v54 }
  0x5b   : > { %2002 = vmatprep.mubr.msk.bf16.mxu1 %vm863_vm0, %v2340_v55 }
  0x5f   : > { %993 = vmatmul.mubr.bf16.gmra.mxu0 %v2339_v56 }
  0x60   : > { %1000 = vmatprep.mubr.bf16.mxu0 %v2343_v57 }
  0x62   : > { %1154 = vmatmul.mubr.bf16.gmra.mxu1 %v2342_v58 }
  0x63   : > { %2003 = vmatprep.mubr.msk.bf16.mxu1 %vm863_vm0, %v2346_v59 }
  0x67   : > { %1001 = vmatmul.mubr.bf16.gmra.mxu0 %v2345_v60 }
  0x68   : > { %1008 = vmatprep.mubr.bf16.mxu0 %v2349_v61 }
  0x6a   : > { %1162 = vmatmul.mubr.bf16.gmra.mxu1 %v2348_v62 }
  0x6b   : > { %2004 = vmatprep.mubr.msk.bf16.mxu1 %vm863_vm0, %v2352_v63 }
  0x6f   : > { %1009 = vmatmul.mubr.bf16.gmra.mxu0 %v2351_v0 }
  0x70   : > { %1016 = vmatprep.mubr.bf16.mxu0 %v2355_v1 }
  0x72   : > { %1170 = vmatmul.mubr.bf16.gmra.mxu1 %v2354_v2 }
  0x73   : > { %2005 = vmatprep.mubr.msk.bf16.mxu1 %vm863_vm0, %v2358_v3 }
  0x77   : > { %1017 = vmatmul.mubr.bf16.gmra.mxu0 %v2357_v4 }
  0x78   : > { %1024 = vmatprep.mubr.bf16.mxu0 %v2361_v5 }
  0x7a   : > { %1178 = vmatmul.mubr.bf16.gmra.mxu1 %v2360_v6 }
  0x7b   : > { %2006 = vmatprep.mubr.msk.bf16.mxu1 %vm863_vm0, %v2364_v7 }
  0x7f   : > { %1025 = vmatmul.mubr.bf16.gmra.mxu0 %v2363_v9 }
  0x80   : > { %1032 = vmatprep.mubr.bf16.mxu0 %v2367_v11 }
  0x82   : > { %1186 = vmatmul.mubr.bf16.gmra.mxu1 %v2366_v12 }
  0x83   : > { %2007 = vmatprep.mubr.msk.bf16.mxu1 %vm863_vm0, %v2370_v13 }
  0x87   : > { %1033 = vmatmul.mubr.bf16.gmra.mxu0 %v2369_v14 }
  0x88   : > { %1040 = vmatprep.mubr.bf16.mxu0 %v2373_v15 }
  0x8a   : > { %1194 = vmatmul.mubr.bf16.gmra.mxu1 %v2372_v16 }
  0x8b   : > { %2008 = vmatprep.mubr.msk.bf16.mxu1 %vm863_vm0, %v2376_v17 }
  0x8f   : > { %1041 = vmatmul.mubr.bf16.gmra.mxu0 %v2375_v18 }
  0x90   : > { %1048 = vmatprep.mubr.bf16.mxu0 %v2379_v19 }
  0x92   : > { %1202 = vmatmul.mubr.bf16.gmra.mxu1 %v2378_v20 }
  0x93   : > { %2009 = vmatprep.mubr.msk.bf16.mxu1 %vm863_vm0, %v2382_v21 }
  0x97   : > { %1049 = vmatmul.mubr.bf16.gmra.mxu0 %v2381_v22 }
  0x98   : > { %1056 = vmatprep.mubr.bf16.mxu0 %v2385_v23 }
  0x9a   : > { %1210 = vmatmul.mubr.bf16.gmra.mxu1 %v2384_v24 }
  0x9b   : > { %2010 = vmatprep.mubr.msk.bf16.mxu1 %vm863_vm0, %v2388_v25 }
  0x9f   : > { %1057 = vmatmul.mubr.bf16.gmra.mxu0 %v2387_v26 }
  0xa0   : > { %1064 = vmatprep.mubr.bf16.mxu0 %v2391_v27 }
  0xa2   : > { %1218 = vmatmul.mubr.bf16.gmra.mxu1 %v2390_v28 }
  0xa3   : > { %2011 = vmatprep.mubr.msk.bf16.mxu1 %vm863_vm0, %v2394_v29 }
  0xa7   : > { %1065 = vmatmul.mubr.bf16.gmra.mxu0 %v2393_v30 }
  0xaa   : > { %1226 = vmatmul.mubr.bf16.gmra.mxu1 %v2396_v31 }
  0xef   : > { %v2066_v32 = vpop.f32.mrf.mxu0 }
  0xf1   : > { %v2067_v33 = vpop.f32.mrf.mxu0 }
  0xf2   : > { %v2068_v35 = vadd.f32 %v2067_v33, %v2066_v32  ;;  %v1107_v36 = vpop.f32.mrf.mxu1 }
  0xf3   : > { %v2069_v37 = vpop.f32.mrf.mxu0 }
  0xf4   : > { %v947_v38 = vadd.f32 %v2068_v35, %v2647_v34  ;;  %v1109_v39 = vpop.f32.mrf.mxu1 }
  0xf5   : > { %v2070_v40 = vpop.f32.mrf.mxu0 }
  0xf6   : > { %v1108_v41 = vadd.f32 %v1107_v36, %v947_v38  ;;  %v2071_v42 = vadd.f32 %v2070_v40, %v2069_v37  ;;  %v1110_v43 = vpop.f32.mrf.mxu1 }
  0xf7   : > { %v2072_v44 = vpop.f32.mrf.mxu0 }
  0xf8   : > { %v1234_v45 = vmax.f32 %v1108_v41, 0.0  ;;  %v950_v46 = vadd.f32 %v2071_v42, %v2647_v34  ;;  %v1112_v47 = vpop.f32.mrf.mxu1 }
  0xf9   : > { %v2073_v48 = vpop.f32.mrf.mxu0 }
  0xfa   : > { %v1111_v49 = vadd.f32 %v1110_v43, %v950_v46  ;;  %v2074_v50 = vadd.f32 %v2073_v48, %v2072_v44  ;;  %v1115_v51 = vpop.f32.mrf.mxu1  ;;  %2209 = vmatprep.mubr.msk.f32.mxu0 %vm1278_vm1, %v1234_v45 }
  0xfb   : > { %v2075_v52 = vpop.f32.mrf.mxu0 }
  0xfc   : > { %v1235_v53 = vmax.f32 %v1111_v49, 0.0  ;;  %v955_v54 = vadd.f32 %v2074_v50, %v2647_v34  ;;  %v1117_v55 = vpop.f32.mrf.mxu1 }
  0xfd   : > { %v2076_v56 = vpop.f32.mrf.mxu0 }
  0xfe   : > { %v1116_v57 = vadd.f32 %v1115_v51, %v955_v54  ;;  %v2077_v58 = vadd.f32 %v2076_v56, %v2075_v52  ;;  %v1118_v59 = vpop.f32.mrf.mxu1  ;;  %2210 = vmatmul.mubr.msk.f32.vlgmr.msra.gmra.mxu0 %vm1278_vm1, %v1235_v53 }
  0xff   : > { %v2078_v60 = vpop.f32.mrf.mxu0 }
 0x100   : > { %v1236_v61 = vmax.f32 %v1116_v57, 0.0  ;;  %v958_v62 = vadd.f32 %v2077_v58, %v2647_v34  ;;  %v1120_v63 = vpop.f32.mrf.mxu1 }
 0x101   : > { %v2079_v0 = vpop.f32.mrf.mxu0 }
 0x102   : > { %v1119_v1 = vadd.f32 %v1118_v59, %v958_v62  ;;  %v2080_v2 = vadd.f32 %v2079_v0, %v2078_v60  ;;  %v1123_v3 = vpop.f32.mrf.mxu1  ;;  %2212 = vmatprep.mubr.msk.f32.mxu0 %vm1278_vm1, %v1236_v61 }
 0x103   : > { %v2081_v4 = vpop.f32.mrf.mxu0 }
 0x104   : > { %v1237_v5 = vmax.f32 %v1119_v1, 0.0  ;;  %v963_v6 = vadd.f32 %v2080_v2, %v2647_v34  ;;  %v1125_v7 = vpop.f32.mrf.mxu1 }
 0x105   : > { %v2082_v8 = vpop.f32.mrf.mxu0 }
 0x106   : > { %v1124_v9 = vadd.f32 %v1123_v3, %v963_v6  ;;  %v2083_v10 = vadd.f32 %v2082_v8, %v2081_v4  ;;  %v1126_v11 = vpop.f32.mrf.mxu1  ;;  %2213 = vmatmul.mubr.msk.f32.gmra.mxu0 %vm1278_vm1, %v1237_v5 }
 0x107   : > { %v2084_v12 = vpop.f32.mrf.mxu0 }
 0x108   : > { %v1238_v13 = vmax.f32 %v1124_v9, 0.0  ;;  %v966_v14 = vadd.f32 %v2083_v10, %v2647_v34  ;;  %v1128_v15 = vpop.f32.mrf.mxu1 }
 0x109   : > { %v2085_v16 = vpop.f32.mrf.mxu0 }
 0x10a   : > { %v1127_v17 = vadd.f32 %v1126_v11, %v966_v14  ;;  %v2086_v18 = vadd.f32 %v2085_v16, %v2084_v12  ;;  %v1131_v19 = vpop.f32.mrf.mxu1  ;;  %2215 = vmatprep.mubr.msk.f32.mxu0 %vm1278_vm1, %v1238_v13 }
 0x10b   : > { %v2087_v20 = vpop.f32.mrf.mxu0 }
 0x10c   : > { %v1239_v21 = vmax.f32 %v1127_v17, 0.0  ;;  %v971_v22 = vadd.f32 %v2086_v18, %v2647_v34  ;;  %v1133_v23 = vpop.f32.mrf.mxu1 }
 0x10d   : > { %v2088_v24 = vpop.f32.mrf.mxu0 }
 0x10e   : > { %v1132_v25 = vadd.f32 %v1131_v19, %v971_v22  ;;  %v2089_v26 = vadd.f32 %v2088_v24, %v2087_v20  ;;  %v1134_v27 = vpop.f32.mrf.mxu1  ;;  %2216 = vmatmul.mubr.msk.f32.gmra.mxu0 %vm1278_vm1, %v1239_v21 }
 0x10f   : > { %v2090_v28 = vpop.f32.mrf.mxu0 }
 0x110   : > { %v1240_v29 = vmax.f32 %v1132_v25, 0.0  ;;  %v974_v30 = vadd.f32 %v2089_v26, %v2647_v34  ;;  %v1136_v31 = vpop.f32.mrf.mxu1 }
 0x111   : > { %v2091_v32 = vpop.f32.mrf.mxu0 }
 0x112   : > { %v1135_v33 = vadd.f32 %v1134_v27, %v974_v30  ;;  %v2092_v35 = vadd.f32 %v2091_v32, %v2090_v28  ;;  %v1139_v36 = vpop.f32.mrf.mxu1  ;;  %2218 = vmatprep.mubr.msk.f32.mxu0 %vm1278_vm1, %v1240_v29 }
 0x113   : > { %v2093_v37 = vpop.f32.mrf.mxu0 }
 0x114   : > { %v1241_v38 = vmax.f32 %v1135_v33, 0.0  ;;  %v979_v39 = vadd.f32 %v2092_v35, %v2647_v34  ;;  %v1141_v40 = vpop.f32.mrf.mxu1 }
 0x115   : > { %v2094_v41 = vpop.f32.mrf.mxu0 }
 0x116   : > { %v1140_v42 = vadd.f32 %v1139_v36, %v979_v39  ;;  %v2095_v43 = vadd.f32 %v2094_v41, %v2093_v37  ;;  %v1142_v44 = vpop.f32.mrf.mxu1  ;;  %2219 = vmatmul.mubr.msk.f32.gmra.mxu0 %vm1278_vm1, %v1241_v38 }
 0x117   : > { %v2096_v45 = vpop.f32.mrf.mxu0 }
 0x118   : > { %v1242_v46 = vmax.f32 %v1140_v42, 0.0  ;;  %v982_v47 = vadd.f32 %v2095_v43, %v2647_v34  ;;  %v1144_v48 = vpop.f32.mrf.mxu1 }
 0x119   : > { %v2097_v49 = vpop.f32.mrf.mxu0 }
 0x11a   : > { %v1143_v50 = vadd.f32 %v1142_v44, %v982_v47  ;;  %v2098_v51 = vadd.f32 %v2097_v49, %v2096_v45  ;;  %v1147_v52 = vpop.f32.mrf.mxu1  ;;  %2221 = vmatprep.mubr.msk.f32.mxu0 %vm1278_vm1, %v1242_v46 }
 0x11b   : > { %v2099_v53 = vpop.f32.mrf.mxu0 }
 0x11c   : > { %v1243_v54 = vmax.f32 %v1143_v50, 0.0  ;;  %v987_v55 = vadd.f32 %v2098_v51, %v2647_v34  ;;  %v1149_v56 = vpop.f32.mrf.mxu1 }
 0x11d   : > { %v2100_v57 = vpop.f32.mrf.mxu0 }
 0x11e   : > { %v1148_v58 = vadd.f32 %v1147_v52, %v987_v55  ;;  %v2101_v59 = vadd.f32 %v2100_v57, %v2099_v53  ;;  %v1150_v60 = vpop.f32.mrf.mxu1  ;;  %2222 = vmatmul.mubr.msk.f32.gmra.mxu0 %vm1278_vm1, %v1243_v54 }
 0x11f   : > { %v2102_v61 = vpop.f32.mrf.mxu0 }
 0x120   : > { %v1244_v62 = vmax.f32 %v1148_v58, 0.0  ;;  %v990_v63 = vadd.f32 %v2101_v59, %v2647_v34  ;;  %v1152_v0 = vpop.f32.mrf.mxu1 }
 0x121   : > { %v2103_v1 = vpop.f32.mrf.mxu0 }
 0x122   : > { %v1151_v2 = vadd.f32 %v1150_v60, %v990_v63  ;;  %v2104_v3 = vadd.f32 %v2103_v1, %v2102_v61  ;;  %v1155_v4 = vpop.f32.mrf.mxu1  ;;  %2224 = vmatprep.mubr.msk.f32.mxu0 %vm1278_vm1, %v1244_v62 }
 0x123   : > { %v2105_v5 = vpop.f32.mrf.mxu0 }
 0x124   : > { %v1245_v6 = vmax.f32 %v1151_v2, 0.0  ;;  %v995_v7 = vadd.f32 %v2104_v3, %v2647_v34  ;;  %v1157_v8 = vpop.f32.mrf.mxu1 }
 0x125   : > { %v2106_v9 = vpop.f32.mrf.mxu0 }
 0x126   : > { %v1156_v10 = vadd.f32 %v1155_v4, %v995_v7  ;;  %v2107_v11 = vadd.f32 %v2106_v9, %v2105_v5  ;;  %v1158_v12 = vpop.f32.mrf.mxu1  ;;  %2225 = vmatmul.mubr.msk.f32.gmra.mxu0 %vm1278_vm1, %v1245_v6 }
 0x127   : > { %v2108_v13 = vpop.f32.mrf.mxu0 }
 0x128   : > { %v1246_v14 = vmax.f32 %v1156_v10, 0.0  ;;  %v998_v15 = vadd.f32 %v2107_v11, %v2647_v34  ;;  %v1160_v16 = vpop.f32.mrf.mxu1 }
 0x129   : > { %v2109_v17 = vpop.f32.mrf.mxu0 }
 0x12a   : > { %v1159_v18 = vadd.f32 %v1158_v12, %v998_v15  ;;  %v2110_v19 = vadd.f32 %v2109_v17, %v2108_v13  ;;  %v1163_v20 = vpop.f32.mrf.mxu1  ;;  %2227 = vmatprep.mubr.msk.f32.mxu0 %vm1278_vm1, %v1246_v14 }
 0x12b   : > { %v2111_v21 = vpop.f32.mrf.mxu0 }
 0x12c   : > { %v1247_v22 = vmax.f32 %v1159_v18, 0.0  ;;  %v1003_v23 = vadd.f32 %v2110_v19, %v2647_v34  ;;  %v1165_v24 = vpop.f32.mrf.mxu1 }
 0x12d   : > { %v2112_v25 = vpop.f32.mrf.mxu0 }
 0x12e   : > { %v1164_v26 = vadd.f32 %v1163_v20, %v1003_v23  ;;  %v2113_v27 = vadd.f32 %v2112_v25, %v2111_v21  ;;  %v1166_v28 = vpop.f32.mrf.mxu1  ;;  %2228 = vmatmul.mubr.msk.f32.gmra.mxu0 %vm1278_vm1, %v1247_v22 }
 0x12f   : > { %v2114_v29 = vpop.f32.mrf.mxu0 }
 0x130   : > { %v1248_v30 = vmax.f32 %v1164_v26, 0.0  ;;  %v1006_v31 = vadd.f32 %v2113_v27, %v2647_v34  ;;  %v1168_v32 = vpop.f32.mrf.mxu1 }
 0x131   : > { %v2115_v33 = vpop.f32.mrf.mxu0 }
 0x132   : > { %v1167_v35 = vadd.f32 %v1166_v28, %v1006_v31  ;;  %v2116_v36 = vadd.f32 %v2115_v33, %v2114_v29  ;;  %v1171_v37 = vpop.f32.mrf.mxu1  ;;  %2230 = vmatprep.mubr.msk.f32.mxu0 %vm1278_vm1, %v1248_v30 }
 0x133   : > { %v2117_v38 = vpop.f32.mrf.mxu0 }
 0x134   : > { %v1249_v39 = vmax.f32 %v1167_v35, 0.0  ;;  %v1011_v40 = vadd.f32 %v2116_v36, %v2647_v34  ;;  %v1173_v41 = vpop.f32.mrf.mxu1 }
 0x135   : > { %v2118_v42 = vpop.f32.mrf.mxu0 }
 0x136   : > { %v1172_v43 = vadd.f32 %v1171_v37, %v1011_v40  ;;  %v2119_v44 = vadd.f32 %v2118_v42, %v2117_v38  ;;  %v1174_v45 = vpop.f32.mrf.mxu1  ;;  %2231 = vmatmul.mubr.msk.f32.gmra.mxu0 %vm1278_vm1, %v1249_v39 }
 0x137   : > { %v2120_v46 = vpop.f32.mrf.mxu0 }
 0x138   : > { %v1250_v47 = vmax.f32 %v1172_v43, 0.0  ;;  %v1014_v48 = vadd.f32 %v2119_v44, %v2647_v34  ;;  %v1176_v49 = vpop.f32.mrf.mxu1 }
 0x139   : > { %v2121_v50 = vpop.f32.mrf.mxu0 }
 0x13a   : > { %v1175_v51 = vadd.f32 %v1174_v45, %v1014_v48  ;;  %v2122_v52 = vadd.f32 %v2121_v50, %v2120_v46  ;;  %v1179_v53 = vpop.f32.mrf.mxu1  ;;  %2233 = vmatprep.mubr.msk.f32.mxu0 %vm1278_vm1, %v1250_v47 }
 0x13b   : > { %v2123_v54 = vpop.f32.mrf.mxu0 }
 0x13c   : > { %v1251_v55 = vmax.f32 %v1175_v51, 0.0  ;;  %v1019_v56 = vadd.f32 %v2122_v52, %v2647_v34  ;;  %v1181_v57 = vpop.f32.mrf.mxu1 }
 0x13d   : > { %v2124_v58 = vpop.f32.mrf.mxu0 }
 0x13e   : > { %v1180_v59 = vadd.f32 %v1179_v53, %v1019_v56  ;;  %v2125_v60 = vadd.f32 %v2124_v58, %v2123_v54  ;;  %v1182_v61 = vpop.f32.mrf.mxu1  ;;  %2234 = vmatmul.mubr.msk.f32.gmra.mxu0 %vm1278_vm1, %v1251_v55 }
 0x13f   : > { %v2126_v62 = vpop.f32.mrf.mxu0 }
 0x140   : > { %v1252_v63 = vmax.f32 %v1180_v59, 0.0  ;;  %v1022_v0 = vadd.f32 %v2125_v60, %v2647_v34  ;;  %v1184_v1 = vpop.f32.mrf.mxu1 }
 0x141   : > { %v2127_v2 = vpop.f32.mrf.mxu0 }
 0x142   : > { %v1183_v3 = vadd.f32 %v1182_v61, %v1022_v0  ;;  %v2128_v4 = vadd.f32 %v2127_v2, %v2126_v62  ;;  %v1187_v5 = vpop.f32.mrf.mxu1  ;;  %2236 = vmatprep.mubr.msk.f32.mxu1 %vm1278_vm1, %v1252_v63 }
 0x143   : > { %v2129_v6 = vpop.f32.mrf.mxu0 }
 0x144   : > { %v1253_v7 = vmax.f32 %v1183_v3, 0.0  ;;  %v1027_v8 = vadd.f32 %v2128_v4, %v2647_v34  ;;  %v1189_v9 = vpop.f32.mrf.mxu1 }
 0x145   : > { %v2130_v10 = vpop.f32.mrf.mxu0 }
 0x146   : > { %v1188_v11 = vadd.f32 %v1187_v5, %v1027_v8  ;;  %v2131_v12 = vadd.f32 %v2130_v10, %v2129_v6  ;;  %v1190_v13 = vpop.f32.mrf.mxu1  ;;  %2237 = vmatmul.mubr.msk.f32.vlgmr.msra.gmra.mxu1 %vm1278_vm1, %v1253_v7 }
 0x147   : > { %v2132_v14 = vpop.f32.mrf.mxu0 }
 0x148   : > { %v1254_v15 = vmax.f32 %v1188_v11, 0.0  ;;  %v1030_v16 = vadd.f32 %v2131_v12, %v2647_v34  ;;  %v1192_v17 = vpop.f32.mrf.mxu1 }
 0x149   : > { %v2133_v18 = vpop.f32.mrf.mxu0 }
 0x14a   : > { %v1191_v19 = vadd.f32 %v1190_v13, %v1030_v16  ;;  %v2134_v20 = vadd.f32 %v2133_v18, %v2132_v14  ;;  %v1195_v21 = vpop.f32.mrf.mxu1  ;;  %2239 = vmatprep.mubr.msk.f32.mxu1 %vm1278_vm1, %v1254_v15 }
 0x14b   : > { %v2135_v22 = vpop.f32.mrf.mxu0 }
 0x14c   : > { %v1255_v23 = vmax.f32 %v1191_v19, 0.0  ;;  %v1035_v24 = vadd.f32 %v2134_v20, %v2647_v34  ;;  %v1197_v25 = vpop.f32.mrf.mxu1 }
 0x14d   : > { %v2136_v26 = vpop.f32.mrf.mxu0 }
 0x14e   : > { %v1196_v27 = vadd.f32 %v1195_v21, %v1035_v24  ;;  %v2137_v28 = vadd.f32 %v2136_v26, %v2135_v22  ;;  %v1198_v29 = vpop.f32.mrf.mxu1  ;;  %2240 = vmatmul.mubr.msk.f32.gmra.mxu1 %vm1278_vm1, %v1255_v23 }
 0x14f   : > { %v2138_v30 = vpop.f32.mrf.mxu0 }
 0x150   : > { %v1256_v31 = vmax.f32 %v1196_v27, 0.0  ;;  %v1038_v32 = vadd.f32 %v2137_v28, %v2647_v34  ;;  %v1200_v33 = vpop.f32.mrf.mxu1 }
 0x151   : > { %v2139_v35 = vpop.f32.mrf.mxu0 }
 0x152   : > { %v1199_v36 = vadd.f32 %v1198_v29, %v1038_v32  ;;  %v2140_v37 = vadd.f32 %v2139_v35, %v2138_v30  ;;  %v1203_v38 = vpop.f32.mrf.mxu1  ;;  %2242 = vmatprep.mubr.msk.f32.mxu1 %vm1278_vm1, %v1256_v31 }
 0x153   : > { %v2141_v39 = vpop.f32.mrf.mxu0 }
 0x154   : > { %v1257_v40 = vmax.f32 %v1199_v36, 0.0  ;;  %v1043_v41 = vadd.f32 %v2140_v37, %v2647_v34  ;;  %v1205_v42 = vpop.f32.mrf.mxu1  ;;  %v2716_v37 = vld [vmem:[%s2930_s4] ss:$0 sm:$0xff] }
 0x155   : > { %v2142_v43 = vpop.f32.mrf.mxu0 }
 0x156   : > { %v1204_v44 = vadd.f32 %v1203_v38, %v1043_v41  ;;  %v2143_v45 = vadd.f32 %v2142_v43, %v2141_v39  ;;  %v1206_v46 = vpop.f32.mrf.mxu1  ;;  %2243 = vmatmul.mubr.msk.f32.gmra.mxu1 %vm1278_vm1, %v1257_v40 }
 0x157   : > { %v2144_v47 = vpop.f32.mrf.mxu0 }
 0x158   : > { %v1258_v48 = vmax.f32 %v1204_v44, 0.0  ;;  %v1046_v49 = vadd.f32 %v2143_v45, %v2647_v34  ;;  %v1208_v50 = vpop.f32.mrf.mxu1 }
 0x159   : > { %v2145_v51 = vpop.f32.mrf.mxu0 }
 0x15a   : > { %v1207_v52 = vadd.f32 %v1206_v46, %v1046_v49  ;;  %v2146_v53 = vadd.f32 %v2145_v51, %v2144_v47  ;;  %v1211_v54 = vpop.f32.mrf.mxu1  ;;  %2245 = vmatprep.mubr.msk.f32.mxu1 %vm1278_vm1, %v1258_v48 }
 0x15b   : > { %v2147_v55 = vpop.f32.mrf.mxu0 }
 0x15c   : > { %v1259_v56 = vmax.f32 %v1207_v52, 0.0  ;;  %v1051_v57 = vadd.f32 %v2146_v53, %v2647_v34  ;;  %v1213_v58 = vpop.f32.mrf.mxu1 }
 0x15d   : > { %v2148_v59 = vpop.f32.mrf.mxu0 }
 0x15e   : > { %v1212_v60 = vadd.f32 %v1211_v54, %v1051_v57  ;;  %v2149_v61 = vadd.f32 %v2148_v59, %v2147_v55  ;;  %v1214_v62 = vpop.f32.mrf.mxu1  ;;  %2246 = vmatmul.mubr.msk.f32.gmra.mxu1 %vm1278_vm1, %v1259_v56 }
 0x15f   : > { %v2150_v63 = vpop.f32.mrf.mxu0 }
 0x160   : > { %v1260_v0 = vmax.f32 %v1212_v60, 0.0  ;;  %v1054_v1 = vadd.f32 %v2149_v61, %v2647_v34  ;;  %v1216_v2 = vpop.f32.mrf.mxu1 }
 0x161   : > { %v2151_v3 = vpop.f32.mrf.mxu0 }
 0x162   : > { %v1215_v4 = vadd.f32 %v1214_v62, %v1054_v1  ;;  %v2152_v5 = vadd.f32 %v2151_v3, %v2150_v63  ;;  %v1219_v6 = vpop.f32.mrf.mxu1  ;;  %2248 = vmatprep.mubr.msk.f32.mxu1 %vm1278_vm1, %v1260_v0 }
 0x163   : > { %v2153_v7 = vpop.f32.mrf.mxu0 }
 0x164   : > { %v1261_v8 = vmax.f32 %v1215_v4, 0.0  ;;  %v1059_v9 = vadd.f32 %v2152_v5, %v2647_v34  ;;  %v1221_v10 = vpop.f32.mrf.mxu1 }
 0x165   : > { %v2154_v11 = vpop.f32.mrf.mxu0 }
 0x166   : > { %v1220_v12 = vadd.f32 %v1219_v6, %v1059_v9  ;;  %v2155_v13 = vadd.f32 %v2154_v11, %v2153_v7  ;;  %v1222_v14 = vpop.f32.mrf.mxu1  ;;  %2249 = vmatmul.mubr.msk.f32.gmra.mxu1 %vm1278_vm1, %v1261_v8 }
 0x167   : > { %v2156_v15 = vpop.f32.mrf.mxu0 }
 0x168   : > { %v1262_v16 = vmax.f32 %v1220_v12, 0.0  ;;  %v1062_v17 = vadd.f32 %v2155_v13, %v2647_v34  ;;  %v1224_v18 = vpop.f32.mrf.mxu1 }
 0x169   : > { %v2157_v19 = vpop.f32.mrf.mxu0 }
 0x16a   : > { %v1223_v20 = vadd.f32 %v1222_v14, %v1062_v17  ;;  %v2158_v21 = vadd.f32 %v2157_v19, %v2156_v15  ;;  %v1227_v22 = vpop.f32.mrf.mxu1  ;;  %2251 = vmatprep.mubr.msk.f32.mxu1 %vm1278_vm1, %v1262_v16 }
 0x16b   : > { %v2159_v23 = vpop.f32.mrf.mxu0 }
 0x16c   : > { %v1263_v24 = vmax.f32 %v1223_v20, 0.0  ;;  %v1067_v25 = vadd.f32 %v2158_v21, %v2647_v34  ;;  %v1229_v26 = vpop.f32.mrf.mxu1 }
 0x16d   : > { %v2160_v27 = vpop.f32.mrf.mxu0 }
 0x16e   : > { %v1228_v28 = vadd.f32 %v1227_v22, %v1067_v25  ;;  %v2161_v29 = vadd.f32 %v2160_v27, %v2159_v23  ;;  %v1230_v30 = vpop.f32.mrf.mxu1  ;;  %2252 = vmatmul.mubr.msk.f32.gmra.mxu1 %vm1278_vm1, %v1263_v24 }
 0x170   : > { %v1264_v31 = vmax.f32 %v1228_v28, 0.0  ;;  %v1070_v32 = vadd.f32 %v2161_v29, %v2647_v34  ;;  %v1232_v33 = vpop.f32.mrf.mxu1  ;;  %v2722_v34 = vld [vmem:[%s2931_s5] ss:$0 sm:$0xff] }
 0x172   : > { %v1231_v35 = vadd.f32 %v1230_v30, %v1070_v32  ;;  %2254 = vmatprep.mubr.msk.f32.mxu1 %vm1278_vm1, %v1264_v31 }
 0x174   : > { %v1265_v36 = vmax.f32 %v1231_v35, 0.0 }
 0x176   : > { %2255 = vmatmul.mubr.msk.f32.gmra.mxu1 %vm1278_vm1, %v1265_v36 }
 0x1be   : > { %v2211_v38 = vpop.f32.mrf.mxu0 }
 0x1bf   : > { %v1447_v39 = vadd.f32 %v2211_v38, %v2716_v37 }
 0x1c0   : > { %v1441_v40 = vpop.f32.mrf.mxu0 }
 0x1c1   : > { %v1601_v41 = vmax.f32 %v1447_v39, 0.0  ;;  %v1442_v42 = vadd.f32 %v2716_v37, %v1441_v40 }
 0x1c3   : > { %v1600_v43 = vmax.f32 %v1442_v42, 0.0  ;;  %v1640_v44 = vmul.f32 %v2722_v34, %v1601_v41 }
 0x1c5   : > { %v1675_v45 = vsel %vm1671_vm2, %v1640_v44, 0.0  ;;  %v1639_v46 = vmul.f32 %v2722_v34, %v1600_v43 }
 0x1c6   : > { %1676 = vadd.xlane.f32.xlu0 %v1675_v45  ;;  %v2214_v47 = vpop.f32.mrf.mxu0 }
 0x1c7   : > { %v1457_v48 = vadd.f32 %v2214_v47, %v2716_v37  ;;  %v1672_v52 = vsel %vm1671_vm2, %v1639_v46, 0.0 }
 0x1c8   : > { %v1451_v49 = vpop.f32.mrf.mxu0 }
 0x1c9   : > { %v1603_v50 = vmax.f32 %v1457_v48, 0.0  ;;  %v1452_v51 = vadd.f32 %v2716_v37, %v1451_v49 }
 0x1ca   : > { %1673 = vadd.xlane.f32.xlu0 %v1672_v52 }
 0x1cb   : > { %v1602_v53 = vmax.f32 %v1452_v51, 0.0  ;;  %v1642_v54 = vmul.f32 %v2722_v34, %v1603_v50 }
 0x1cd   : > { %v1681_v55 = vsel %vm1671_vm2, %v1642_v54, 0.0  ;;  %v1641_v56 = vmul.f32 %v2722_v34, %v1602_v53 }
 0x1ce   : > { %1682 = vadd.xlane.f32.xlu1 %v1681_v55  ;;  %v2217_v57 = vpop.f32.mrf.mxu0 }
 0x1cf   : > { %v1467_v58 = vadd.f32 %v2217_v57, %v2716_v37  ;;  %v1678_v62 = vsel %vm1671_vm2, %v1641_v56, 0.0 }
 0x1d0   : > { %v1461_v59 = vpop.f32.mrf.mxu0 }
 0x1d1   : > { %v1605_v60 = vmax.f32 %v1467_v58, 0.0  ;;  %v1462_v61 = vadd.f32 %v2716_v37, %v1461_v59 }
 0x1d2   : > { %1679 = vadd.xlane.f32.xlu1 %v1678_v62 }
 0x1d3   : > { %v1604_v63 = vmax.f32 %v1462_v61, 0.0  ;;  %v1644_v0 = vmul.f32 %v2722_v34, %v1605_v60 }
 0x1d5   : > { %v1687_v1 = vsel %vm1671_vm2, %v1644_v0, 0.0  ;;  %v1643_v2 = vmul.f32 %v2722_v34, %v1604_v63 }
 0x1d6   : > { %v2220_v3 = vpop.f32.mrf.mxu0  ;;  %1688 = vadd.xlane.f32.xlu1 %v1687_v1 }
 0x1d7   : > { %v1477_v4 = vadd.f32 %v2220_v3, %v2716_v37  ;;  %v1684_v5 = vsel %vm1671_vm2, %v1643_v2, 0.0 }
 0x1d8   : > { %v1471_v6 = vpop.f32.mrf.mxu0  ;;  %1685 = vadd.xlane.f32.xlu0 %v1684_v5 }
 0x1d9   : > { %v1607_v7 = vmax.f32 %v1477_v4, 0.0  ;;  %v1472_v8 = vadd.f32 %v2716_v37, %v1471_v6 }
 0x1db   : > { %v1606_v9 = vmax.f32 %v1472_v8, 0.0  ;;  %v1646_v10 = vmul.f32 %v2722_v34, %v1607_v7 }
 0x1dd   : > { %v1693_v11 = vsel %vm1671_vm2, %v1646_v10, 0.0  ;;  %v1645_v12 = vmul.f32 %v2722_v34, %v1606_v9 }
 0x1de   : > { %v2223_v13 = vpop.f32.mrf.mxu0  ;;  %1694 = vadd.xlane.f32.xlu1 %v1693_v11 }
 0x1df   : > { %v1487_v14 = vadd.f32 %v2223_v13, %v2716_v37  ;;  %v1690_v15 = vsel %vm1671_vm2, %v1645_v12, 0.0 }
 0x1e0   : > { %v1481_v16 = vpop.f32.mrf.mxu0  ;;  %1691 = vadd.xlane.f32.xlu0 %v1690_v15 }
 0x1e1   : > { %v1609_v17 = vmax.f32 %v1487_v14, 0.0  ;;  %v1482_v18 = vadd.f32 %v2716_v37, %v1481_v16 }
 0x1e3   : > { %v1608_v19 = vmax.f32 %v1482_v18, 0.0  ;;  %v1648_v20 = vmul.f32 %v2722_v34, %v1609_v17 }
 0x1e5   : > { %v1699_v21 = vsel %vm1671_vm2, %v1648_v20, 0.0  ;;  %v1647_v22 = vmul.f32 %v2722_v34, %v1608_v19 }
 0x1e6   : > { %v2226_v23 = vpop.f32.mrf.mxu0  ;;  %1700 = vadd.xlane.f32.xlu1 %v1699_v21 }
 0x1e7   : > { %v1497_v24 = vadd.f32 %v2226_v23, %v2716_v37  ;;  %v1696_v25 = vsel %vm1671_vm2, %v1647_v22, 0.0 }
 0x1e8   : > { %v1491_v26 = vpop.f32.mrf.mxu0  ;;  %1697 = vadd.xlane.f32.xlu0 %v1696_v25 }
 0x1e9   : > { %v1611_v27 = vmax.f32 %v1497_v24, 0.0  ;;  %v1492_v28 = vadd.f32 %v2716_v37, %v1491_v26 }
 0x1eb   : > { %v1610_v29 = vmax.f32 %v1492_v28, 0.0  ;;  %v1650_v30 = vmul.f32 %v2722_v34, %v1611_v27 }
 0x1ed   : > { %v1705_v31 = vsel %vm1671_vm2, %v1650_v30, 0.0  ;;  %v1649_v32 = vmul.f32 %v2722_v34, %v1610_v29 }
 0x1ee   : > { %v2229_v33 = vpop.f32.mrf.mxu0  ;;  %1706 = vadd.xlane.f32.xlu1 %v1705_v31 }
 0x1ef   : > { %v1507_v35 = vadd.f32 %v2229_v33, %v2716_v37  ;;  %v1702_v36 = vsel %vm1671_vm2, %v1649_v32, 0.0 }
 0x1f0   : > { %v1501_v38 = vpop.f32.mrf.mxu0  ;;  %1703 = vadd.xlane.f32.xlu0 %v1702_v36 }
 0x1f1   : > { %v1613_v39 = vmax.f32 %v1507_v35, 0.0  ;;  %v1502_v40 = vadd.f32 %v2716_v37, %v1501_v38 }
 0x1f3   : > { %v1612_v41 = vmax.f32 %v1502_v40, 0.0  ;;  %v1652_v42 = vmul.f32 %v2722_v34, %v1613_v39 }
 0x1f5   : > { %v1711_v43 = vsel %vm1671_vm2, %v1652_v42, 0.0  ;;  %v1651_v44 = vmul.f32 %v2722_v34, %v1612_v41 }
 0x1f6   : > { %v2232_v45 = vpop.f32.mrf.mxu0  ;;  %1712 = vadd.xlane.f32.xlu1 %v1711_v43 }
 0x1f7   : > { %v1517_v46 = vadd.f32 %v2232_v45, %v2716_v37  ;;  %v1708_v47 = vsel %vm1671_vm2, %v1651_v44, 0.0 }
 0x1f8   : > { %v1511_v48 = vpop.f32.mrf.mxu0  ;;  %1709 = vadd.xlane.f32.xlu0 %v1708_v47 }
 0x1f9   : > { %v1615_v49 = vmax.f32 %v1517_v46, 0.0  ;;  %v1512_v50 = vadd.f32 %v2716_v37, %v1511_v48 }
 0x1fb   : > { %v1614_v51 = vmax.f32 %v1512_v50, 0.0  ;;  %v1654_v52 = vmul.f32 %v2722_v34, %v1615_v49 }
 0x1fd   : > { %v1717_v53 = vsel %vm1671_vm2, %v1654_v52, 0.0  ;;  %v1653_v54 = vmul.f32 %v2722_v34, %v1614_v51 }
 0x1fe   : > { %v2235_v55 = vpop.f32.mrf.mxu0  ;;  %1718 = vadd.xlane.f32.xlu1 %v1717_v53 }
 0x1ff   : > { %v1527_v56 = vadd.f32 %v2235_v55, %v2716_v37  ;;  %v1714_v57 = vsel %vm1671_vm2, %v1653_v54, 0.0 }
 0x200   : > { %v1521_v58 = vpop.f32.mrf.mxu0  ;;  %1715 = vadd.xlane.f32.xlu0 %v1714_v57 }
 0x201   : > { %v1617_v59 = vmax.f32 %v1527_v56, 0.0  ;;  %v1522_v60 = vadd.f32 %v2716_v37, %v1521_v58 }
 0x203   : > { %v1616_v61 = vmax.f32 %v1522_v60, 0.0  ;;  %v1656_v62 = vmul.f32 %v2722_v34, %v1617_v59 }
 0x205   : > { %v1723_v63 = vsel %vm1671_vm2, %v1656_v62, 0.0  ;;  %v1655_v0 = vmul.f32 %v2722_v34, %v1616_v61 }
 0x206   : > { %v2238_v1 = vpop.f32.mrf.mxu1  ;;  %1724 = vadd.xlane.f32.xlu1 %v1723_v63 }
 0x207   : > { %v1537_v2 = vadd.f32 %v2238_v1, %v2716_v37  ;;  %v1720_v3 = vsel %vm1671_vm2, %v1655_v0, 0.0 }
 0x208   : > { %v1531_v4 = vpop.f32.mrf.mxu1  ;;  %1721 = vadd.xlane.f32.xlu0 %v1720_v3 }
 0x209   : > { %v1619_v5 = vmax.f32 %v1537_v2, 0.0  ;;  %v1532_v6 = vadd.f32 %v2716_v37, %v1531_v4 }
 0x20b   : > { %v1618_v7 = vmax.f32 %v1532_v6, 0.0  ;;  %v1658_v8 = vmul.f32 %v2722_v34, %v1619_v5 }
 0x20d   : > { %v1729_v9 = vsel %vm1671_vm2, %v1658_v8, 0.0  ;;  %v1657_v10 = vmul.f32 %v2722_v34, %v1618_v7 }
 0x20e   : > { %v2241_v11 = vpop.f32.mrf.mxu1  ;;  %1730 = vadd.xlane.f32.xlu1 %v1729_v9 }
 0x20f   : > { %v1547_v12 = vadd.f32 %v2241_v11, %v2716_v37  ;;  %v1726_v13 = vsel %vm1671_vm2, %v1657_v10, 0.0  ;;  %v2820_v10 = vld [vmem:[#allocation2] ss:$0 sm:$0xff] }
 0x210   : > { %v1541_v14 = vpop.f32.mrf.mxu1  ;;  %1727 = vadd.xlane.f32.xlu0 %v1726_v13 }
 0x211   : > { %v1621_v15 = vmax.f32 %v1547_v12, 0.0  ;;  %v1542_v16 = vadd.f32 %v2716_v37, %v1541_v14 }
 0x213   : > { %v1620_v17 = vmax.f32 %v1542_v16, 0.0  ;;  %v1660_v18 = vmul.f32 %v2722_v34, %v1621_v15 }
 0x215   : > { %v1735_v19 = vsel %vm1671_vm2, %v1660_v18, 0.0  ;;  %v1659_v20 = vmul.f32 %v2722_v34, %v1620_v17 }
 0x216   : > { %v2244_v21 = vpop.f32.mrf.mxu1  ;;  %1736 = vadd.xlane.f32.xlu1 %v1735_v19 }
 0x217   : > { %v1557_v22 = vadd.f32 %v2244_v21, %v2716_v37  ;;  %v1732_v23 = vsel %vm1671_vm2, %v1659_v20, 0.0 }
 0x218   : > { %v1551_v24 = vpop.f32.mrf.mxu1  ;;  %1733 = vadd.xlane.f32.xlu0 %v1732_v23 }
 0x219   : > { %v1623_v25 = vmax.f32 %v1557_v22, 0.0  ;;  %v1552_v26 = vadd.f32 %v2716_v37, %v1551_v24 }
 0x21b   : > { %v1622_v27 = vmax.f32 %v1552_v26, 0.0  ;;  %v1662_v28 = vmul.f32 %v2722_v34, %v1623_v25 }
 0x21d   : > { %v1741_v29 = vsel %vm1671_vm2, %v1662_v28, 0.0  ;;  %v1661_v30 = vmul.f32 %v2722_v34, %v1622_v27 }
 0x21e   : > { %v2247_v31 = vpop.f32.mrf.mxu1  ;;  %1742 = vadd.xlane.f32.xlu1 %v1741_v29 }
 0x21f   : > { %v1567_v32 = vadd.f32 %v2247_v31, %v2716_v37  ;;  %v1738_v33 = vsel %vm1671_vm2, %v1661_v30, 0.0 }
 0x220   : > { %v1561_v35 = vpop.f32.mrf.mxu1  ;;  %1739 = vadd.xlane.f32.xlu0 %v1738_v33 }
 0x221   : > { %v1625_v36 = vmax.f32 %v1567_v32, 0.0  ;;  %v1562_v38 = vadd.f32 %v2716_v37, %v1561_v35 }
 0x223   : > { %v1624_v39 = vmax.f32 %v1562_v38, 0.0  ;;  %v1664_v40 = vmul.f32 %v2722_v34, %v1625_v36 }
 0x225   : > { %v1747_v41 = vsel %vm1671_vm2, %v1664_v40, 0.0  ;;  %v1663_v42 = vmul.f32 %v2722_v34, %v1624_v39 }
 0x226   : > { %v2250_v43 = vpop.f32.mrf.mxu1  ;;  %1748 = vadd.xlane.f32.xlu1 %v1747_v41 }
 0x227   : > { %v1577_v44 = vadd.f32 %v2250_v43, %v2716_v37  ;;  %v1744_v45 = vsel %vm1671_vm2, %v1663_v42, 0.0 }
 0x228   : > { %v1571_v46 = vpop.f32.mrf.mxu1  ;;  %1745 = vadd.xlane.f32.xlu0 %v1744_v45 }
 0x229   : > { %v1627_v47 = vmax.f32 %v1577_v44, 0.0  ;;  %v1572_v48 = vadd.f32 %v2716_v37, %v1571_v46 }
 0x22b   : > { %v1626_v49 = vmax.f32 %v1572_v48, 0.0  ;;  %v1666_v50 = vmul.f32 %v2722_v34, %v1627_v47 }
 0x22d   : > { %v1753_v51 = vsel %vm1671_vm2, %v1666_v50, 0.0  ;;  %v1665_v52 = vmul.f32 %v2722_v34, %v1626_v49 }
 0x22e   : > { %v2253_v53 = vpop.f32.mrf.mxu1  ;;  %1754 = vadd.xlane.f32.xlu1 %v1753_v51 }
 0x22f   : > { %v1587_v54 = vadd.f32 %v2253_v53, %v2716_v37  ;;  %v1750_v55 = vsel %vm1671_vm2, %v1665_v52, 0.0 }
 0x230   : > { %v1581_v56 = vpop.f32.mrf.mxu1  ;;  %1751 = vadd.xlane.f32.xlu0 %v1750_v55 }
 0x231   : > { %v1629_v57 = vmax.f32 %v1587_v54, 0.0  ;;  %v1582_v58 = vadd.f32 %v2716_v37, %v1581_v56 }
 0x233   : > { %v1628_v59 = vmax.f32 %v1582_v58, 0.0  ;;  %v1668_v60 = vmul.f32 %v2722_v34, %v1629_v57 }
 0x235   : > { %v1759_v61 = vsel %vm1671_vm2, %v1668_v60, 0.0  ;;  %v1667_v62 = vmul.f32 %v2722_v34, %v1628_v59 }
 0x236   : > { %v2256_v63 = vpop.f32.mrf.mxu1  ;;  %1760 = vadd.xlane.f32.xlu1 %v1759_v61 }
 0x237   : > { %v1597_v0 = vadd.f32 %v2256_v63, %v2716_v37  ;;  %v1756_v1 = vsel %vm1671_vm2, %v1667_v62, 0.0 }
 0x238   : > { %v1591_v2 = vpop.f32.mrf.mxu1  ;;  %1757 = vadd.xlane.f32.xlu0 %v1756_v1 }
 0x239   : > { %v1631_v3 = vmax.f32 %v1597_v0, 0.0  ;;  %v1592_v4 = vadd.f32 %v2716_v37, %v1591_v2 }
 0x23b   : > { %v1630_v5 = vmax.f32 %v1592_v4, 0.0  ;;  %v1670_v6 = vmul.f32 %v2722_v34, %v1631_v3 }
 0x23d   : > { %v1765_v7 = vsel %vm1671_vm2, %v1670_v6, 0.0  ;;  %v1669_v8 = vmul.f32 %v2722_v34, %v1630_v5 }
 0x23e   : > { %1766 = vadd.xlane.f32.xlu1 %v1765_v7 }
 0x23f   : > { %v1762_v9 = vsel %vm1671_vm2, %v1669_v8, 0.0 }
 0x240   : > { %1763 = vadd.xlane.f32.xlu0 %v1762_v9 }
 0x24f   : > { %v1677_v37 = vpop.xlane.xlu0 %1676 }
 0x250   : > { %v1776_v34 = vadd.f32 %v2820_v10, %v1677_v37 }
 0x252   : > { %1809 = vst.msk [vmem:[%s2825_s11 + $0x8] sm:$0xff] %vm1807_vm3, %v1776_v34 }
 0x253   : > { %v1674_v11 = vpop.xlane.xlu0 %1673 }
 0x254   : > { %v1775_v12 = vadd.f32 %v2820_v10, %v1674_v11 }
 0x256   : > { %1808 = vst.msk [vmem:[%s2825_s11] sm:$0xff] %vm1807_vm3, %v1775_v12 }
 0x257   : > { %v1683_v13 = vpop.xlane.xlu1 %1682 }
 0x258   : > { %v1778_v14 = vadd.f32 %v2820_v10, %v1683_v13 }
 0x25a   : > { %1811 = vst.msk [vmem:[%s2825_s11 + $0x18] sm:$0xff] %vm1807_vm3, %v1778_v14 }
 0x25b   : > { %v1680_v15 = vpop.xlane.xlu1 %1679 }
 0x25c   : > { %v1777_v16 = vadd.f32 %v2820_v10, %v1680_v15 }
 0x25e   : > { %1810 = vst.msk [vmem:[%s2825_s11 + $0x10] sm:$0xff] %vm1807_vm3, %v1777_v16 }
 0x25f   : > { %v1689_v17 = vpop.xlane.xlu1 %1688 }
 0x260   : > { %v1780_v18 = vadd.f32 %v2820_v10, %v1689_v17 }
 0x261   : > { %v1686_v19 = vpop.xlane.xlu0 %1685 }
 0x262   : > { %1813 = vst.msk [vmem:[%s2825_s11 + $0x28] sm:$0xff] %vm1807_vm3, %v1780_v18  ;;  %v1779_v20 = vadd.f32 %v2820_v10, %v1686_v19 }
 0x264   : > { %1812 = vst.msk [vmem:[%s2825_s11 + $0x20] sm:$0xff] %vm1807_vm3, %v1779_v20 }
 0x267   : > { %v1695_v21 = vpop.xlane.xlu1 %1694 }
 0x268   : > { %v1782_v22 = vadd.f32 %v2820_v10, %v1695_v21 }
 0x269   : > { %v1692_v23 = vpop.xlane.xlu0 %1691 }
 0x26a   : > { %1815 = vst.msk [vmem:[%s2825_s11 + $0x38] sm:$0xff] %vm1807_vm3, %v1782_v22  ;;  %v1781_v24 = vadd.f32 %v2820_v10, %v1692_v23 }
 0x26c   : > { %1814 = vst.msk [vmem:[%s2825_s11 + $0x30] sm:$0xff] %vm1807_vm3, %v1781_v24 }
 0x26f   : > { %v1701_v25 = vpop.xlane.xlu1 %1700 }
 0x270   : > { %v1784_v26 = vadd.f32 %v2820_v10, %v1701_v25 }
 0x271   : > { %v1698_v27 = vpop.xlane.xlu0 %1697 }
 0x272   : > { %1817 = vst.msk [vmem:[%s2825_s11 + $0x48] sm:$0xff] %vm1807_vm3, %v1784_v26  ;;  %v1783_v28 = vadd.f32 %v2820_v10, %v1698_v27 }
 0x274   : > { %1816 = vst.msk [vmem:[%s2825_s11 + $0x40] sm:$0xff] %vm1807_vm3, %v1783_v28 }
 0x277   : > { %v1707_v29 = vpop.xlane.xlu1 %1706 }
 0x278   : > { %v1786_v30 = vadd.f32 %v2820_v10, %v1707_v29 }
 0x279   : > { %v1704_v31 = vpop.xlane.xlu0 %1703 }
 0x27a   : > { %1819 = vst.msk [vmem:[%s2825_s11 + $0x58] sm:$0xff] %vm1807_vm3, %v1786_v30  ;;  %v1785_v32 = vadd.f32 %v2820_v10, %v1704_v31 }
 0x27c   : > { %1818 = vst.msk [vmem:[%s2825_s11 + $0x50] sm:$0xff] %vm1807_vm3, %v1785_v32 }
 0x27f   : > { %v1713_v33 = vpop.xlane.xlu1 %1712 }
 0x280   : > { %v1788_v35 = vadd.f32 %v2820_v10, %v1713_v33 }
 0x281   : > { %v1710_v36 = vpop.xlane.xlu0 %1709 }
 0x282   : > { %1821 = vst.msk [vmem:[%s2825_s11 + $0x68] sm:$0xff] %vm1807_vm3, %v1788_v35  ;;  %v1787_v38 = vadd.f32 %v2820_v10, %v1710_v36 }
 0x284   : > { %1820 = vst.msk [vmem:[%s2825_s11 + $0x60] sm:$0xff] %vm1807_vm3, %v1787_v38 }
 0x287   : > { %v1719_v39 = vpop.xlane.xlu1 %1718 }
 0x288   : > { %v1790_v40 = vadd.f32 %v2820_v10, %v1719_v39 }
 0x289   : > { %v1716_v41 = vpop.xlane.xlu0 %1715 }
 0x28a   : > { %1823 = vst.msk [vmem:[%s2825_s11 + $0x78] sm:$0xff] %vm1807_vm3, %v1790_v40  ;;  %v1789_v42 = vadd.f32 %v2820_v10, %v1716_v41 }
 0x28c   : > { %1822 = vst.msk [vmem:[%s2825_s11 + $0x70] sm:$0xff] %vm1807_vm3, %v1789_v42 }
 0x28f   : > { %v1725_v43 = vpop.xlane.xlu1 %1724 }
 0x290   : > { %v1792_v44 = vadd.f32 %v2820_v10, %v1725_v43 }
 0x291   : > { %v1722_v45 = vpop.xlane.xlu0 %1721 }
 0x292   : > { %1825 = vst.msk [vmem:[%s2825_s11 + $0x88] sm:$0xff] %vm1807_vm3, %v1792_v44  ;;  %v1791_v46 = vadd.f32 %v2820_v10, %v1722_v45 }
 0x294   : > { %1824 = vst.msk [vmem:[%s2825_s11 + $0x80] sm:$0xff] %vm1807_vm3, %v1791_v46 }
 0x297   : > { %v1731_v47 = vpop.xlane.xlu1 %1730 }
 0x298   : > { %v1794_v48 = vadd.f32 %v2820_v10, %v1731_v47 }
 0x299   : > { %v1728_v49 = vpop.xlane.xlu0 %1727 }
 0x29a   : > { %1827 = vst.msk [vmem:[%s2825_s11 + $0x98] sm:$0xff] %vm1807_vm3, %v1794_v48  ;;  %v1793_v50 = vadd.f32 %v2820_v10, %v1728_v49 }
 0x29c   : > { %1826 = vst.msk [vmem:[%s2825_s11 + $0x90] sm:$0xff] %vm1807_vm3, %v1793_v50 }
 0x29f   : > { %v1737_v51 = vpop.xlane.xlu1 %1736 }
 0x2a0   : > { %v1796_v52 = vadd.f32 %v2820_v10, %v1737_v51 }
 0x2a1   : > { %v1734_v53 = vpop.xlane.xlu0 %1733 }
 0x2a2   : > { %1829 = vst.msk [vmem:[%s2825_s11 + $0xa8] sm:$0xff] %vm1807_vm3, %v1796_v52  ;;  %v1795_v54 = vadd.f32 %v2820_v10, %v1734_v53 }
 0x2a4   : > { %1828 = vst.msk [vmem:[%s2825_s11 + $0xa0] sm:$0xff] %vm1807_vm3, %v1795_v54 }
 0x2a7   : > { %v1743_v55 = vpop.xlane.xlu1 %1742 }
 0x2a8   : > { %v1798_v56 = vadd.f32 %v2820_v10, %v1743_v55 }
 0x2a9   : > { %v1740_v57 = vpop.xlane.xlu0 %1739 }
 0x2aa   : > { %1831 = vst.msk [vmem:[%s2825_s11 + $0xb8] sm:$0xff] %vm1807_vm3, %v1798_v56  ;;  %v1797_v58 = vadd.f32 %v2820_v10, %v1740_v57 }
 0x2ac   : > { %1830 = vst.msk [vmem:[%s2825_s11 + $0xb0] sm:$0xff] %vm1807_vm3, %v1797_v58 }
 0x2af   : > { %v1749_v59 = vpop.xlane.xlu1 %1748 }
 0x2b0   : > { %v1800_v60 = vadd.f32 %v2820_v10, %v1749_v59 }
 0x2b1   : > { %v1746_v61 = vpop.xlane.xlu0 %1745 }
 0x2b2   : > { %1833 = vst.msk [vmem:[%s2825_s11 + $0xc8] sm:$0xff] %vm1807_vm3, %v1800_v60  ;;  %v1799_v62 = vadd.f32 %v2820_v10, %v1746_v61 }
 0x2b4   : > { %1832 = vst.msk [vmem:[%s2825_s11 + $0xc0] sm:$0xff] %vm1807_vm3, %v1799_v62 }
 0x2b7   : > { %v1755_v63 = vpop.xlane.xlu1 %1754 }
 0x2b8   : > { %v1802_v0 = vadd.f32 %v2820_v10, %v1755_v63 }
 0x2b9   : > { %v1752_v1 = vpop.xlane.xlu0 %1751 }
 0x2ba   : > { %1835 = vst.msk [vmem:[%s2825_s11 + $0xd8] sm:$0xff] %vm1807_vm3, %v1802_v0  ;;  %v1801_v2 = vadd.f32 %v2820_v10, %v1752_v1 }
 0x2bc   : > { %1834 = vst.msk [vmem:[%s2825_s11 + $0xd0] sm:$0xff] %vm1807_vm3, %v1801_v2 }
 0x2bf   : > { %v1761_v3 = vpop.xlane.xlu1 %1760 }
 0x2c0   : > { %v1804_v4 = vadd.f32 %v2820_v10, %v1761_v3 }
 0x2c1   : > { %v1758_v5 = vpop.xlane.xlu0 %1757 }
 0x2c2   : > { %1837 = vst.msk [vmem:[%s2825_s11 + $0xe8] sm:$0xff] %vm1807_vm3, %v1804_v4  ;;  %v1803_v6 = vadd.f32 %v2820_v10, %v1758_v5 }
 0x2c4   : > { %1836 = vst.msk [vmem:[%s2825_s11 + $0xe0] sm:$0xff] %vm1807_vm3, %v1803_v6 }
 0x2c7   : > { %v1767_v7 = vpop.xlane.xlu1 %1766 }
 0x2c8   : > { %v1806_v8 = vadd.f32 %v2820_v10, %v1767_v7 }
 0x2c9   : > { %v1764_v9 = vpop.xlane.xlu0 %1763 }
 0x2ca   : > { %1839 = vst.msk [vmem:[%s2825_s11 + $0xf8] sm:$0xff] %vm1807_vm3, %v1806_v8  ;;  %v1805_v37 = vadd.f32 %v2820_v10, %v1764_v9 }
 0x2cc   : > { %1838 = vst.msk [vmem:[%s2825_s11 + $0xf0] sm:$0xff] %vm1807_vm3, %v1805_v37 }
 0x2cd PF: > { %s19_s26 = sadd.s32 1, %s2403_s26  }
 0x2ce   : > { %p16_p4 = scmp.ge.s32.totalorder %s19_s26, 4  }
 0x2d0   :  { %18 = sbr.rel (!%p16_p4) target bundleno = 3 (0x3), region = 78 }

</bundles_post_ra>
